<compile_context>
chip_gen: v7x
topology: tpu7x:2x2x1
jax: 0.10.0
libtpu: 0.0.40
codegen_flags: <defaults>
</compile_context>

<pallas_src>
import jax
import jax.numpy as jnp
from jax.experimental import pallas as pl
from jax.experimental.pallas import tpu as pltpu


def _round_up(x, m):
    return ((x + m - 1) // m) * m


def value_head_kernel(x_ref, w1_ref, b1_ref, w2_ref, b2_ref, w3_ref, o_ref):
    """Fused Linear->Tanh->Linear->ReLU->(H->1 reduce) on one (TM, H) tile."""
    x = x_ref[...]                                        # (TM, H) bf16
    # Layer 1: bf16 MXU matmul, f32 accumulation; bias + tanh in f32.
    h1 = jnp.dot(x, w1_ref[...], preferred_element_type=jnp.float32)
    h1 = jnp.tanh(h1 + b1_ref[...])                       # (TM, H) f32
    # Layer 2: cast to bf16 only at the MXU boundary, keep f32 elementwise.
    h2 = jnp.dot(h1.astype(jnp.bfloat16), w2_ref[...],
                 preferred_element_type=jnp.float32)
    h2 = jnp.maximum(h2 + b2_ref[...], 0.0)               # (TM, H) f32
    # Summary head (H -> 1): VPU multiply + XLU lane reduction (MXU stays free
    # for the big matmuls of the next tile).
    out = jnp.sum(h2 * w3_ref[...], axis=-1, keepdims=True)   # (TM, 1) f32
    o_ref[...] = out.astype(o_ref.dtype)


def custom_value_head(hidden_states, params, *, tm=512):
    """hidden_states: (B, S, H) float32 -> (B, S, 1) float32."""
    B, S, H = hidden_states.shape
    M = B * S
    w1, b1, w2, b2, w3, b3 = params

    # bf16 weights for the two HxH MXU matmuls (f32 accumulation in-kernel);
    # the H->1 head stays in f32 and is fed as a (1, H) row for the VPU.
    w1_bf = w1.astype(jnp.bfloat16)
    w2_bf = w2.astype(jnp.bfloat16)
    w3_row = w3.reshape(1, H).astype(jnp.float32)

    # Row-tile size: multiple of 8 sublanes, capped at 512 rows.
    TM = min(tm, _round_up(M, 8))
    M_pad = _round_up(M, TM)
    num_tiles = M_pad // TM

    # Cast the activation stream to bf16 (halves HBM traffic) and pad M.
    x2d = hidden_states.reshape(M, H).astype(jnp.bfloat16)
    if M_pad != M:
        x2d = jnp.pad(x2d, ((0, M_pad - M), (0, 0)))

    # Grid-invariant blocks: single-buffered resident weights / biases.
    resident = dict(pipeline_mode=pl.Buffered(1))

    out2d = pl.pallas_call(
        value_head_kernel,
        out_shape=jax.ShapeDtypeStruct((M_pad, 1), jnp.float32),
        grid=(num_tiles,),
        in_specs=[
            pl.BlockSpec((TM, H), lambda i: (i, 0)),                 # x tile
            pl.BlockSpec((H, H), lambda i: (0, 0), **resident),      # w1 (bf16)
            pl.BlockSpec((1, H), lambda i: (0, 0), **resident),      # b1
            pl.BlockSpec((H, H), lambda i: (0, 0), **resident),      # w2 (bf16)
            pl.BlockSpec((1, H), lambda i: (0, 0), **resident),      # b2
            pl.BlockSpec((1, H), lambda i: (0, 0), **resident),      # w3 row
        ],
        out_specs=pl.BlockSpec((TM, 1), lambda i: (i, 0)),
        compiler_params=pltpu.CompilerParams(
            dimension_semantics=("parallel",),
            vmem_limit_bytes=32 * 1024 * 1024,
        ),
    )(x2d, w1_bf, b1, w2_bf, b2, w3_row)

    # Scalar bias of the summary head: cheap add in the wrapper.
    out2d = out2d + b3.reshape(1, 1)
    return out2d[:M].reshape(B, S, 1)


def init_params(key, hidden_size):
    """Deterministic parameter init (weights stored as (in, out))."""
    k1, k2, k3, k4, k5, k6 = jax.random.split(key, 6)
    scale = 1.0 / jnp.sqrt(hidden_size)
    w1 = jax.random.uniform(k1, (hidden_size, hidden_size), jnp.float32,
                            -scale, scale)
    b1 = jax.random.uniform(k2, (1, hidden_size), jnp.float32, -scale, scale)
    w2 = jax.random.uniform(k3, (hidden_size, hidden_size), jnp.float32,
                            -scale, scale)
    b2 = jax.random.uniform(k4, (1, hidden_size), jnp.float32, -scale, scale)
    w3 = jax.random.uniform(k5, (hidden_size, 1), jnp.float32, -scale, scale)
    b3 = jax.random.uniform(k6, (1, 1), jnp.float32, -scale, scale)
    return (w1, b1, w2, b2, w3, b3)


def reference(hidden_states, params):
    """Plain-JAX reference using the same bf16-matmul / f32-accumulate recipe."""
    w1, b1, w2, b2, w3, b3 = params
    x = hidden_states.astype(jnp.bfloat16)
    h1 = jnp.dot(x, w1.astype(jnp.bfloat16),
                 preferred_element_type=jnp.float32) + b1[0]
    h1 = jnp.tanh(h1)
    h2 = jnp.dot(h1.astype(jnp.bfloat16), w2.astype(jnp.bfloat16),
                 preferred_element_type=jnp.float32) + b2[0]
    h2 = jnp.maximum(h2, 0.0)
    return jnp.dot(h2, w3) + b3[0]


if __name__ == "__main__":
    batch, seq, hidden = 2, 8, 32
    key = jax.random.PRNGKey(0)
    k_x, k_p = jax.random.split(key)

    hidden_states = jax.random.normal(k_x, (batch, seq, hidden), jnp.float32)
    params = init_params(k_p, hidden)

    out = custom_value_head(hidden_states, params)
    out = jax.block_until_ready(out)

    ref = reference(hidden_states, params)
    assert out.shape == (batch, seq, 1)
    assert jnp.allclose(out, ref, atol=5e-3, rtol=5e-3), float(
        jnp.max(jnp.abs(out - ref)))

    print("KERNEL_OK")
</pallas_src>

<mosaic_0001>
module attributes {stable_mosaic.version = 11 : i64} {
  func.func @value_head_kernel(%arg0: i32, %arg1: memref<16x32xbf16, #tpu.memory_space<vmem>>, %arg2: memref<32x32xbf16, #tpu.memory_space<vmem>>, %arg3: memref<1x32xf32, #tpu.memory_space<vmem>>, %arg4: memref<32x32xbf16, #tpu.memory_space<vmem>>, %arg5: memref<1x32xf32, #tpu.memory_space<vmem>>, %arg6: memref<1x32xf32, #tpu.memory_space<vmem>>, %arg7: memref<16x1xf32, #tpu.memory_space<vmem>>) attributes {dimension_semantics = [#tpu.dimension_semantics<parallel>], iteration_bounds = array<i64: 1>, scalar_prefetch = 0 : i64, scratch_operands = 0 : i64, tpu.core_type = #tpu.core_type<tc>, window_params = [{transform_indices = @transform_0, window_bounds = array<i64: 16, 32>}, {pipeline_mode = #tpu.pipeline_mode<synchronous>, transform_indices = @transform_1, window_bounds = array<i64: 32, 32>}, {pipeline_mode = #tpu.pipeline_mode<synchronous>, transform_indices = @transform_2, window_bounds = array<i64: 1, 32>}, {pipeline_mode = #tpu.pipeline_mode<synchronous>, transform_indices = @transform_3, window_bounds = array<i64: 32, 32>}, {pipeline_mode = #tpu.pipeline_mode<synchronous>, transform_indices = @transform_4, window_bounds = array<i64: 1, 32>}, {pipeline_mode = #tpu.pipeline_mode<synchronous>, transform_indices = @transform_5, window_bounds = array<i64: 1, 32>}, {transform_indices = @transform_6, window_bounds = array<i64: 16, 1>}]} {
    %c0 = arith.constant 0 : index
    %c0_0 = arith.constant 0 : index
    %0 = vector.load %arg1[%c0, %c0_0] : memref<16x32xbf16, #tpu.memory_space<vmem>>, vector<16x32xbf16>
    %c0_1 = arith.constant 0 : index
    %c0_2 = arith.constant 0 : index
    %1 = vector.load %arg2[%c0_1, %c0_2] : memref<32x32xbf16, #tpu.memory_space<vmem>>, vector<32x32xbf16>
    %cst = arith.constant dense<0.000000e+00> : vector<16x32xf32>
    %2 = tpu.matmul %0, %1, %cst {dimension_numbers = #tpu.dot_dimension_numbers<[1], [0], [0], [1], [0, 0, 1, 1], [], []>} : vector<16x32xbf16>, vector<32x32xbf16>, vector<16x32xf32> -> vector<16x32xf32>
    %c0_3 = arith.constant 0 : index
    %c0_4 = arith.constant 0 : index
    %3 = vector.load %arg3[%c0_3, %c0_4] : memref<1x32xf32, #tpu.memory_space<vmem>>, vector<1x32xf32>
    %4 = vector.broadcast %3 : vector<1x32xf32> to vector<16x32xf32>
    %5 = arith.addf %2, %4 : vector<16x32xf32>
    %6 = math.tanh %5 : vector<16x32xf32>
    %7 = arith.truncf %6 : vector<16x32xf32> to vector<16x32xbf16>
    %c0_5 = arith.constant 0 : index
    %c0_6 = arith.constant 0 : index
    %8 = vector.load %arg4[%c0_5, %c0_6] : memref<32x32xbf16, #tpu.memory_space<vmem>>, vector<32x32xbf16>
    %cst_7 = arith.constant dense<0.000000e+00> : vector<16x32xf32>
    %9 = tpu.matmul %7, %8, %cst_7 {dimension_numbers = #tpu.dot_dimension_numbers<[1], [0], [0], [1], [0, 0, 1, 1], [], []>} : vector<16x32xbf16>, vector<32x32xbf16>, vector<16x32xf32> -> vector<16x32xf32>
    %c0_8 = arith.constant 0 : index
    %c0_9 = arith.constant 0 : index
    %10 = vector.load %arg5[%c0_8, %c0_9] : memref<1x32xf32, #tpu.memory_space<vmem>>, vector<1x32xf32>
    %11 = vector.broadcast %10 : vector<1x32xf32> to vector<16x32xf32>
    %12 = arith.addf %9, %11 : vector<16x32xf32>
    %cst_10 = arith.constant 0.000000e+00 : f32
    %13 = vector.broadcast %cst_10 : f32 to vector<16x32xf32>
    %14 = arith.maximumf %12, %13 : vector<16x32xf32>
    %c0_11 = arith.constant 0 : index
    %c0_12 = arith.constant 0 : index
    %15 = vector.load %arg6[%c0_11, %c0_12] : memref<1x32xf32, #tpu.memory_space<vmem>>, vector<1x32xf32>
    %16 = vector.broadcast %15 : vector<1x32xf32> to vector<16x32xf32>
    %17 = arith.mulf %14, %16 : vector<16x32xf32>
    %cst_13 = arith.constant dense<0.000000e+00> : vector<16xf32>
    %18 = vector.multi_reduction <add>, %17, %cst_13 [1] : vector<16x32xf32> to vector<16xf32>
    %19 = vector.shape_cast %18 : vector<16xf32> to vector<16x1xf32>
    %c0_14 = arith.constant 0 : index
    %c0_15 = arith.constant 0 : index
    %20 = vector.load %arg7[%c0_14, %c0_15] : memref<16x1xf32, #tpu.memory_space<vmem>>, vector<16x1xf32>
    tpu.vector_store %arg7[%c0_14, %c0_15], %19 {strides = array<i32>} : memref<16x1xf32, #tpu.memory_space<vmem>>, vector<16x1xf32>,
    return
  }
  func.func @transform_0(%arg0: i32) -> (i32, i32) {
    %c0_i32 = arith.constant 0 : i32
    %c0_i32_0 = arith.constant 0 : i32
    return %arg0, %c0_i32 : i32, i32
  }
  func.func @transform_1(%arg0: i32) -> (i32, i32) {
    %c0_i32 = arith.constant 0 : i32
    %c0_i32_0 = arith.constant 0 : i32
    %c0_i32_1 = arith.constant 0 : i32
    return %c0_i32, %c0_i32_0 : i32, i32
  }
  func.func @transform_2(%arg0: i32) -> (i32, i32) {
    %c0_i32 = arith.constant 0 : i32
    %c0_i32_0 = arith.constant 0 : i32
    %c0_i32_1 = arith.constant 0 : i32
    return %c0_i32, %c0_i32_0 : i32, i32
  }
  func.func @transform_3(%arg0: i32) -> (i32, i32) {
    %c0_i32 = arith.constant 0 : i32
    %c0_i32_0 = arith.constant 0 : i32
    %c0_i32_1 = arith.constant 0 : i32
    return %c0_i32, %c0_i32_0 : i32, i32
  }
  func.func @transform_4(%arg0: i32) -> (i32, i32) {
    %c0_i32 = arith.constant 0 : i32
    %c0_i32_0 = arith.constant 0 : i32
    %c0_i32_1 = arith.constant 0 : i32
    return %c0_i32, %c0_i32_0 : i32, i32
  }
  func.func @transform_5(%arg0: i32) -> (i32, i32) {
    %c0_i32 = arith.constant 0 : i32
    %c0_i32_0 = arith.constant 0 : i32
    %c0_i32_1 = arith.constant 0 : i32
    return %c0_i32, %c0_i32_0 : i32, i32
  }
  func.func @transform_6(%arg0: i32) -> (i32, i32) {
    %c0_i32 = arith.constant 0 : i32
    %c0_i32_0 = arith.constant 0 : i32
    return %arg0, %c0_i32 : i32, i32
  }
}

</mosaic_0001>

<bundles_post_ra>
// kernel: tpu_custom_call.1
= control target key start
LH: loop header
LB: loop body
LE: loop exit
PB: predicated region body
PF: predicated region fallthrough
CT: control target
= control target key end

     0   :  { %11 = vsyncpa [#allocation3], 0  ;;  %s467_s0 = inlined_call_operand.hbm [shape: bf16[16,32], index: 0, kind: input, shape index: {}]   ;;  %s468_s1 = inlined_call_operand.hbm [shape: bf16[32,32], index: 1, kind: input, shape index: {}]   ;;  %s469_s2 = inlined_call_operand.vmem [shape: f32[1,32], index: 2, kind: input, shape index: {}]   ;;  %s470_s3 = inlined_call_operand.hbm [shape: bf16[32,32], index: 3, kind: input, shape index: {}]   ;;  %s471_s4 = inlined_call_operand.vmem [shape: f32[1,32], index: 4, kind: input, shape index: {}]   ;;  %s472_s5 = inlined_call_operand.vmem [shape: f32[1,32], index: 5, kind: input, shape index: {}]   ;;  %s473_s6 = inlined_call_operand.vmem [shape: f32[16,1], index: 6, kind: output, shape index: {}]  }
   0x1   :  { %12 = vsyncpa [#allocation5], 0  ;;  %s354_s21 = smov [#allocation4]   ;;  %s355_s23 = smov [#allocation2]  }
   0x2   :  { %s30_s22 = sshll.u32 %s354_s21, 4  ;;  %s18_s24 = sshll.u32 %s355_s23, 4  ;;  %s31_s22 = int_to_ptr.vmem [resolvable:$true] %s30_s22  ;;  %s396_s24 = int_to_ptr.vmem [resolvable:$true] %s18_s24 }
   0x3   :  { %s284_s27 = scalar_lea.hbm %s468_s1, 256 }
   0x4   :  { %p285_p0 = scmp.ne.s32.totalorder %s468_s1, %s284_s27  ;;  %p288_p1 = scmp.lt.u32.totalorder %s284_s27, %s468_s1 }
   0x6   :  { %p290_p2 = pnand %p288_p1, %p285_p0 }
   0x8   :  { %293 = shalt.err (!%p290_p2)
}
   0x9   :  { %s294_s8 = scalar_lea.vmem %s31_s22, 256  ;;  %p299_p4 = scmp.lt.s32.totalorder %s31_s22, %s31_s22 }
   0xa   :  { %p295_p3 = scmp.ne.s32.totalorder %s31_s22, %s294_s8  ;;  %p300_p5 = scmp.lt.s32.totalorder %s294_s8, %s294_s8 }
   0xc   :  { %p301_p6 = por %p300_p5, %p299_p4 }
   0xe   :  { %p302_p7 = pnand %p301_p6, %p295_p3 }
  0x10   :  { %305 = shalt.err (!%p302_p7)
}
  0x11   :  { %s356_s9 = smov 64   ;;  %s357_s10 = smov 4  }
  0x12   :  { %36 = dma.hbm_to_vmem [thread:$0]  %s468_s1, 256, %s31_s22, [#allocation5], %s356_s9, %s356_s9, %s357_s10  }
  0x13   :  { %s306_s15 = scalar_lea.hbm %s467_s0, 128 }
  0x14   :  { %p307_p8 = scmp.ne.s32.totalorder %s467_s0, %s306_s15  ;;  %p310_p9 = scmp.lt.u32.totalorder %s306_s15, %s467_s0 }
  0x16   :  { %p312_p10 = pnand %p310_p9, %p307_p8 }
  0x18   :  { %315 = shalt.err (!%p312_p10)
}
  0x19   :  { %s316_s20 = scalar_lea.vmem %s396_s24, 128  ;;  %p321_p12 = scmp.lt.s32.totalorder %s396_s24, %s396_s24 }
  0x1a   :  { %p317_p11 = scmp.ne.s32.totalorder %s396_s24, %s316_s20  ;;  %p322_p13 = scmp.lt.s32.totalorder %s316_s20, %s316_s20 }
  0x1c   :  { %p323_p0 = por %p322_p13, %p321_p12 }
  0x1e   :  { %p324_p1 = pnand %p323_p0, %p317_p11 }
  0x20   :  { %327 = shalt.err (!%p324_p1)
}
  0x21   :  { %24 = dma.hbm_to_vmem [thread:$0]  %s467_s0, 128, %s396_s24, [#allocation3], %s356_s9, %s356_s9, %s357_s10  }
  0x22   :  { %s358_s22 = smov [#allocation6]   ;;  %s328_s27 = scalar_lea.hbm %s470_s3, 256 }
  0x23   :  { %s44_s23 = sshll.u32 %s358_s22, 4  ;;  %p329_p2 = scmp.ne.s32.totalorder %s470_s3, %s328_s27  ;;  %s45_s23 = int_to_ptr.vmem [resolvable:$true] %s44_s23 }
  0x24   :  { %p332_p3 = scmp.lt.u32.totalorder %s328_s27, %s470_s3 }
  0x26   :  { %p334_p4 = pnand %p332_p3, %p329_p2 }
  0x28   :  { %337 = shalt.err (!%p334_p4)
}
  0x29   :  { %s338_s8 = scalar_lea.vmem %s45_s23, 256  ;;  %p343_p6 = scmp.lt.s32.totalorder %s45_s23, %s45_s23 }
  0x2a   :  { %p339_p5 = scmp.ne.s32.totalorder %s45_s23, %s338_s8  ;;  %p344_p7 = scmp.lt.s32.totalorder %s338_s8, %s338_s8 }
  0x2c   :  { %p345_p8 = por %p344_p7, %p343_p6 }
  0x2e   :  { %p346_p9 = pnand %p345_p8, %p339_p5 }
  0x30   :  { %349 = shalt.err (!%p346_p9)
}
  0x31   :  { %50 = dma.hbm_to_vmem [thread:$0]  %s470_s3, 256, %s45_s23, [#allocation5], %s356_s9, %s356_s9, %s357_s10  }
  0x32   :  { %350 = dma.done.wait [#allocation3], 128  }
  0x33   :  { %351 = vsyncadd [#allocation3], 4294967168 }
  0x34   :  { %352 = dma.done.wait [#allocation5], 512  }
  0x35   :  { %353 = vsyncadd [#allocation5], 4294966784  ;;  %v359_v0 = vmov 0.0   ;;  %vm360_vm0 = vmmov 0   ;;  %v275_v1 = vld [vmem:[#allocation4] sm:$0xff]   ;;  %v276_v2 = vld [vmem:[#allocation4 + $0x8] sm:$0xff]  }
  0x36   :  { %252 = vmatprep.subr.bf16.mxu0 %v359_v0  ;;  %256 = vmatprep.mubr.msk.bf16.mxu0 %vm360_vm0, %v359_v0  ;;  %v277_v3 = vld [vmem:[#allocation2] sm:$0xff]   ;;  %vm95_vm1 = vcmask 261120   ;;  %v278_v4 = vld [vmem:[#allocation6] sm:$0xff]   ;;  %vm227_vm2 = vcmask 7168  }
  0x37   :  { %260 = vmatprep.subr.bf16.mxu1 %v359_v0  ;;  %264 = vmatprep.mubr.msk.bf16.mxu1 %vm360_vm0, %v359_v0  ;;  %v279_v5 = vld [vmem:[#allocation6 + $0x8] sm:$0xff]  }
  0x38   :  { %253 = vmatpush3.bf16.msra.mxu0 %v275_v1  ;;  %261 = vmatpush3.bf16.msra.mxu1 %v278_v4  ;;  %v236_v6 = vld [vmem:[%s469_s2] ss:$0 sm:$0xff] }
  0x39   :  { %254 = vmatprep.subr.bf16.mxu0 %v359_v0  ;;  %262 = vmatprep.subr.bf16.mxu1 %v359_v0  ;;  %v241_v16 = vld [vmem:[%s471_s4] ss:$0 sm:$0xff] }
  0x3a   :  { %v245_v21 = vld [vmem:[%s472_s5] ss:$0 sm:$0xff] }
  0x3c   :  { %255 = vmatpush3.bf16.msra.mxu0 %v276_v2  ;;  %263 = vmatpush3.bf16.msra.mxu1 %v279_v5 }
  0x3f   :  { %257 = vmatmul.mubr.msk.bf16.vlgmr.msra.gmra.mrb[0].mxu0 %vm95_vm1, %v277_v3 }
 0x112   :  { %v133_v7 = vpop.f32.mrb[0].mxu0 }
 0x113   :  { %v134_v8 = vadd.f32 %v236_v6, %v133_v7  ;;  %v258_v9 = vpop.f32.mrb[1].mxu0 }
 0x114   :  { %v136_v10 = vpop.f32.mrb[2].mxu0 }
 0x115   :  { %v137_v11 = vadd.f32 %v236_v6, %v136_v10  ;;  %v259_v12 = vpop.f32.mrb[3].mxu0  ;;  %280 = vtanh.f32 %v134_v8 }
 0x117   :  { %282 = vtanh.f32 %v137_v11 }
 0x11f   :  { %v281_v13 = vpop.eup %280 }
 0x121   :  { %v283_v14 = vpop.eup %282 }
 0x122   :  { %v142_v15 = vpack.c.bf16 %v283_v14, %v281_v13 }
 0x124   :  { %265 = vmatmul.mubr.msk.bf16.vlgmr.msra.gmra.mrb[0].mxu1 %vm95_vm1, %v142_v15 }
 0x1f7   :  { %v203_v17 = vpop.f32.mrb[0].mxu1 }
 0x1f8   :  { %v204_v18 = vadd.f32 %v241_v16, %v203_v17  ;;  %v266_v19 = vpop.f32.mrb[1].mxu1 }
 0x1f9   :  { %v206_v20 = vpop.f32.mrb[2].mxu1 }
 0x1fa   :  { %v210_v22 = vmax.f32 %v204_v18, 0.0  ;;  %v207_v23 = vadd.f32 %v241_v16, %v206_v20  ;;  %v267_v24 = vpop.f32.mrb[3].mxu1 }
 0x1fc   :  { %v211_v25 = vmax.f32 %v207_v23, 0.0  ;;  %v219_v26 = vmul.f32 %v245_v21, %v210_v22 }
 0x1fe   :  { %v221_v27 = vsel %vm95_vm1, %v219_v26, 0.0  ;;  %v220_v28 = vmul.f32 %v245_v21, %v211_v25 }
 0x1ff   :  { %222 = vadd.xlane.f32.xlu0 %v221_v27 }
 0x200   :  { %v224_v29 = vsel %vm95_vm1, %v220_v28, 0.0 }
 0x203   :  { %225 = vadd.xlane.f32.xlu0 %v224_v29 }
 0x28c   :  { %v223_v30 = vpop.xlane.xlu0 %222 }
 0x28d   :  { %228 = vst.msk [vmem:[%s473_s6] sm:$0xff] %vm227_vm2, %v223_v30 }
 0x290   :  { %v226_v31 = vpop.xlane.xlu0 %225 }
 0x291   :  { %229 = vst.msk [vmem:[%s473_s6 + $0x8] sm:$0xff] %vm227_vm2, %v226_v31 }
 0x292   :  { %234 = vsyncpa [#allocation3], 1 }
 0x293   :  { %235 = vsyncpa [#allocation5], 1 }

</bundles_post_ra>
